<compile_context>
chip_gen: v6e
topology: v6e:2x2x1
jax: 0.10.0
libtpu: 0.0.40
codegen_flags: <defaults>
</compile_context>

<pallas_src>
import functools

import jax
import jax.numpy as jnp
from jax import lax
from jax.experimental import pallas as pl
from jax.experimental.pallas import tpu as pltpu


def _round_up(x, m):
    return ((x + m - 1) // m) * m


def _vmem_capacity_bytes():
    # Generation-aware VMEM capacity (v5e/v6e: 128 MiB, v7x: 64 MiB per TC).
    # Fall back to the smallest real capacity so tile choices are always safe.
    try:
        return int(pltpu.get_tpu_info().vmem_capacity_bytes)
    except Exception:
        return 64 * 1024 * 1024


def _default_tile_n(n, c, in_itemsize, vmem_capacity):
    """Largest 128-aligned batch tile whose working set fits ~1/4 of VMEM."""
    c_pad = max(8, _round_up(c, 8))
    # Per batch-column VMEM bytes:
    #   2x double-buffered logits blocks (c_pad sublanes, native dtype)
    # + 2x double-buffered target blocks (1 row padded to 8 sublanes of int32)
    # + ~4 f32 (c_pad, TILE_N)-sized in-kernel temporaries (exp/shifted/iota/where).
    per_col = 2 * c_pad * in_itemsize + 2 * 8 * 4 + 4 * c_pad * 4
    cols = (vmem_capacity // 4) // per_col
    cols = max(128, (cols // 128) * 128)
    return int(min(_round_up(n, 128), cols, 256 * 1024))


def _ce_partial_kernel(pred_ref, tgt_ref, out_ref, *, n_total, tile_n):
    """Per-tile partial sum of cross-entropy NLL over the batch.

    pred_ref: (C, TILE_N) logits (classes on sublanes, batch on lanes)
    tgt_ref : (1, TILE_N) int32 class indices
    out_ref : (1, 1, 1)   f32 partial sum of per-row NLL for this tile
    """
    i = pl.program_id(0)

    logits = pred_ref[...].astype(jnp.float32)                # (C, TILE_N) f32
    tgt = tgt_ref[...]                                        # (1, TILE_N) i32
    c = logits.shape[0]

    # Numerically stable log-sum-exp along the (small) class/sublane axis.
    col_max = jnp.max(logits, axis=0, keepdims=True)          # (1, TILE_N)
    sum_exp = jnp.sum(jnp.exp(logits - col_max), axis=0, keepdims=True)
    lse = jnp.log(sum_exp) + col_max                          # (1, TILE_N)

    # Target logit via select-and-reduce over the class axis (no materialized
    # one-hot; `logits - col_max` above stays single-use and fuses into exp).
    # TODO(synk): out-of-range targets (e.g. ignore_index=-100) silently give
    # picked == 0 rather than erroring/ignoring like torch CrossEntropyLoss.
    cls = lax.broadcasted_iota(jnp.int32, (c, tile_n), 0)     # (C, TILE_N)
    picked = jnp.sum(jnp.where(cls == tgt, logits, 0.0),
                     axis=0, keepdims=True)                   # (1, TILE_N)

    nll = lse - picked                                        # -log p[target]

    rem = n_total % tile_n   # static python int
    if rem == 0:
        # Every tile is full: unmasked sum, no iota/compare/select.
        out_ref[...] = jnp.sum(nll, axis=1, keepdims=True).reshape(1, 1, 1)
    else:
        last = pl.num_programs(0) - 1

        @pl.when(i != last)
        def _full_tile():
            out_ref[...] = jnp.sum(nll, axis=1, keepdims=True).reshape(1, 1, 1)

        @pl.when(i == last)
        def _partial_tile():
            # Keep the select (NOT a multiply-by-mask): padded lanes may hold
            # NaN/Inf garbage and where() does not propagate it.
            col = lax.broadcasted_iota(jnp.int32, (1, tile_n), 1)
            masked = jnp.where(col < rem, nll, 0.0)
            out_ref[...] = jnp.sum(masked, axis=1, keepdims=True).reshape(1, 1, 1)


def focal_loss(inputs, targets, *, alpha=1.0, gamma=2.0, reduce=True,
               block_n=None, class_major=False, buffer_count=None):
    """Pallas equivalent of FocalLoss(alpha, gamma, reduce).forward.

    inputs : (N, C) logits, or (C, N) if class_major=True.  For large N prefer
        class_major=True (skips an extra HBM transpose pass) and/or bf16 logits
        (halves streamed bytes); the kernel upcasts to f32 internally.
    targets: (N,) integer class indices in [0, C).
    buffer_count: optional deeper input pipelining (e.g. 3 on v7x).
    """
    if class_major:
        c, n = inputs.shape
        pred_t = inputs                                       # (C, N) as given
    else:
        n, c = inputs.shape
        # TODO(synk): when XLA does not fuse it, this transpose materializes an
        # extra HBM read+write pass (~3x traffic); producers that can emit
        # class-major logits should call with class_major=True instead.
        pred_t = jnp.transpose(inputs)                        # (C, N)
    assert n >= 1 and c >= 1
    assert targets.shape == (n,)

    tgt2d = targets.astype(jnp.int32).reshape(1, n)           # (1, N)

    cap = _vmem_capacity_bytes()
    itemsize = jnp.dtype(inputs.dtype).itemsize
    if block_n is None:
        tile = _default_tile_n(n, c, itemsize, cap)
    else:
        tile = _round_up(int(block_n), 128)
    grid_n = pl.cdiv(n, tile)

    kernel = functools.partial(_ce_partial_kernel, n_total=n, tile_n=tile)

    if buffer_count is None:
        logits_spec = pl.BlockSpec((c, tile), lambda i: (0, i))
    else:
        logits_spec = pl.BlockSpec((c, tile), lambda i: (0, i),
                                   pipeline_mode=pl.Buffered(int(buffer_count)))

    partials = pl.pallas_call(
        kernel,
        out_shape=jax.ShapeDtypeStruct((grid_n, 1, 1), jnp.float32),
        grid=(grid_n,),
        in_specs=[
            logits_spec,                                      # logits tile
            pl.BlockSpec((1, tile), lambda i: (0, i)),        # targets tile
        ],
        out_specs=pl.BlockSpec((1, 1, 1), lambda i: (i, 0, 0)),
        compiler_params=pltpu.CompilerParams(
            dimension_semantics=("parallel",),
            vmem_limit_bytes=min(int(cap * 3 // 4), 96 * 1024 * 1024)),
    )(pred_t, tgt2d)

    # Tiny cross-tile reduction + scalar focal modulation stay in plain JAX
    # (O(grid) scalar work; keeps scalar transcendentals out of the kernel).
    ce_mean = jnp.sum(partials) / jnp.float32(n)
    pt = jnp.exp(-ce_mean)
    modulator = jnp.maximum(1.0 - pt, 0.0) ** gamma   # clamp: pt can round past 1
    f_loss = alpha * modulator * ce_mean
    return jnp.mean(f_loss) if reduce else f_loss


def _reference(inputs, targets, alpha=1.0, gamma=2.0, reduce=True):
    logp = jax.nn.log_softmax(inputs.astype(jnp.float32), axis=-1)
    ce = -jnp.mean(logp[jnp.arange(inputs.shape[0]), targets])
    pt = jnp.exp(-ce)
    f = alpha * jnp.maximum(1.0 - pt, 0.0) ** gamma * ce
    return jnp.mean(f) if reduce else f


if __name__ == "__main__":
    key = jax.random.PRNGKey(0)
    k1, k2, k3, k4 = jax.random.split(key, 4)

    # Case 1: small batch, single (padded + masked) tile.
    N1, C1 = 16, 5
    x1 = jax.random.normal(k1, (N1, C1), dtype=jnp.float32)
    t1 = jax.random.randint(k2, (N1,), 0, C1, dtype=jnp.int32)
    out1 = jax.block_until_ready(focal_loss(x1, t1))
    ref1 = _reference(x1, t1)
    assert jnp.allclose(out1, ref1, atol=1e-5, rtol=1e-5), (out1, ref1)

    # Case 2: multi-step parallel grid with a remainder tile (block_n=128).
    N2, C2 = 300, 7
    x2 = jax.random.normal(k3, (N2, C2), dtype=jnp.float32)
    t2 = jax.random.randint(k4, (N2,), 0, C2, dtype=jnp.int32)
    out2 = jax.block_until_ready(focal_loss(x2, t2, block_n=128))
    ref2 = _reference(x2, t2)
    assert jnp.allclose(out2, ref2, atol=1e-5, rtol=1e-5), (out2, ref2)

    # Case 3: bf16 logits cross the pallas_call boundary unconverted.
    x2_bf16 = x2.astype(jnp.bfloat16)
    out3 = jax.block_until_ready(focal_loss(x2_bf16, t2, block_n=256))
    ref3 = _reference(x2_bf16, t2)
    assert jnp.allclose(out3, ref3, atol=3e-2, rtol=3e-2), (out3, ref3)

    # Case 4: class-major producer path (no wrapper-side transpose).
    out4 = jax.block_until_ready(
        focal_loss(jnp.transpose(x2), t2, block_n=128, class_major=True))
    assert jnp.allclose(out4, ref2, atol=1e-5, rtol=1e-5), (out4, ref2)

    print("KERNEL_OK")
</pallas_src>

<mosaic_0001>
module attributes {stable_mosaic.version = 11 : i64} {
  func.func @_ce_partial_kernel(%arg0: i32, %arg1: memref<5x128xf32, #tpu.memory_space<vmem>>, %arg2: memref<1x128xi32, #tpu.memory_space<vmem>>, %arg3: memref<1x1x1xf32, #tpu.memory_space<vmem>>) attributes {dimension_semantics = [#tpu.dimension_semantics<parallel>], iteration_bounds = array<i64: 1>, scalar_prefetch = 0 : i64, scratch_operands = 0 : i64, tpu.core_type = #tpu.core_type<tc>, window_params = [{transform_indices = @transform_0, window_bounds = array<i64: 5, 128>}, {transform_indices = @transform_1, window_bounds = array<i64: 1, 128>}, {transform_indices = @transform_2, window_bounds = array<i64: 1, 1, 1>}]} {
    %c0 = arith.constant 0 : index
    %c0_0 = arith.constant 0 : index
    %0 = vector.load %arg1[%c0, %c0_0] : memref<5x128xf32, #tpu.memory_space<vmem>>, vector<5x128xf32>
    %c0_1 = arith.constant 0 : index
    %c0_2 = arith.constant 0 : index
    %1 = vector.load %arg2[%c0_1, %c0_2] : memref<1x128xi32, #tpu.memory_space<vmem>>, vector<1x128xi32>
    %cst = arith.constant dense<0xFF800000> : vector<128xf32>
    %2 = vector.multi_reduction <maximumf>, %0, %cst [0] : vector<5x128xf32> to vector<128xf32>
    %3 = vector.shape_cast %2 : vector<128xf32> to vector<1x128xf32>
    %4 = vector.broadcast %3 : vector<1x128xf32> to vector<5x128xf32>
    %5 = arith.subf %0, %4 : vector<5x128xf32>
    %6 = math.exp %5 : vector<5x128xf32>
    %cst_3 = arith.constant dense<0.000000e+00> : vector<128xf32>
    %7 = vector.multi_reduction <add>, %6, %cst_3 [0] : vector<5x128xf32> to vector<128xf32>
    %8 = vector.shape_cast %7 : vector<128xf32> to vector<1x128xf32>
    %9 = math.log %8 : vector<1x128xf32>
    %10 = arith.addf %9, %3 : vector<1x128xf32>
    %11 = tpu.iota {dimensions = array<i32: 0>} : vector<5x128xi32>
    %12 = vector.broadcast %1 : vector<1x128xi32> to vector<5x128xi32>
    %13 = arith.cmpi eq, %11, %12 : vector<5x128xi32>
    %cst_4 = arith.constant 0.000000e+00 : f32
    %14 = vector.broadcast %cst_4 : f32 to vector<5x128xf32>
    %15 = arith.select %13, %0, %14 : vector<5x128xi1>, vector<5x128xf32>
    %cst_5 = arith.constant dense<0.000000e+00> : vector<128xf32>
    %16 = vector.multi_reduction <add>, %15, %cst_5 [0] : vector<5x128xf32> to vector<128xf32>
    %17 = vector.shape_cast %16 : vector<128xf32> to vector<1x128xf32>
    %18 = arith.subf %10, %17 : vector<1x128xf32>
    %c0_i32 = arith.constant 0 : i32
    %19 = arith.cmpi ne, %arg0, %c0_i32 : i32
    %20 = arith.extui %19 : i1 to i32
    %c0_i32_6 = arith.constant 0 : i32
    %21 = arith.cmpi ne, %20, %c0_i32_6 : i32
    scf.if %21 {
      %cst_9 = arith.constant dense<0.000000e+00> : vector<1xf32>
      %25 = vector.multi_reduction <add>, %18, %cst_9 [1] : vector<1x128xf32> to vector<1xf32>
      %26 = vector.shape_cast %25 : vector<1xf32> to vector<1x1xf32>
      %27 = vector.shape_cast %26 : vector<1x1xf32> to vector<1x1x1xf32>
      %c0_10 = arith.constant 0 : index
      %c0_11 = arith.constant 0 : index
      %c0_12 = arith.constant 0 : index
      %28 = vector.load %arg3[%c0_10, %c0_11, %c0_12] : memref<1x1x1xf32, #tpu.memory_space<vmem>>, vector<1x1x1xf32>
      tpu.vector_store %arg3[%c0_10, %c0_11, %c0_12], %27 {strides = array<i32>} : memref<1x1x1xf32, #tpu.memory_space<vmem>>, vector<1x1x1xf32>,
    } else {
    }
    %c0_i32_7 = arith.constant 0 : i32
    %22 = arith.cmpi eq, %arg0, %c0_i32_7 : i32
    %23 = arith.extui %22 : i1 to i32
    %c0_i32_8 = arith.constant 0 : i32
    %24 = arith.cmpi ne, %23, %c0_i32_8 : i32
    scf.if %24 {
      %25 = tpu.iota {dimensions = array<i32: 1>} : vector<1x128xi32>
      %c16_i32 = arith.constant 16 : i32
      %26 = vector.broadcast %c16_i32 : i32 to vector<1x128xi32>
      %27 = arith.cmpi slt, %25, %26 : vector<1x128xi32>
      %cst_9 = arith.constant 0.000000e+00 : f32
      %28 = vector.broadcast %cst_9 : f32 to vector<1x128xf32>
      %29 = arith.select %27, %18, %28 : vector<1x128xi1>, vector<1x128xf32>
      %cst_10 = arith.constant dense<0.000000e+00> : vector<1xf32>
      %30 = vector.multi_reduction <add>, %29, %cst_10 [1] : vector<1x128xf32> to vector<1xf32>
      %31 = vector.shape_cast %30 : vector<1xf32> to vector<1x1xf32>
      %32 = vector.shape_cast %31 : vector<1x1xf32> to vector<1x1x1xf32>
      %c0_11 = arith.constant 0 : index
      %c0_12 = arith.constant 0 : index
      %c0_13 = arith.constant 0 : index
      %33 = vector.load %arg3[%c0_11, %c0_12, %c0_13] : memref<1x1x1xf32, #tpu.memory_space<vmem>>, vector<1x1x1xf32>
      tpu.vector_store %arg3[%c0_11, %c0_12, %c0_13], %32 {strides = array<i32>} : memref<1x1x1xf32, #tpu.memory_space<vmem>>, vector<1x1x1xf32>,
    } else {
    }
    return
  }
  func.func @transform_0(%arg0: i32) -> (i32, i32) {
    %c0_i32 = arith.constant 0 : i32
    %c0_i32_0 = arith.constant 0 : i32
    return %c0_i32, %arg0 : i32, i32
  }
  func.func @transform_1(%arg0: i32) -> (i32, i32) {
    %c0_i32 = arith.constant 0 : i32
    %c0_i32_0 = arith.constant 0 : i32
    return %c0_i32, %arg0 : i32, i32
  }
  func.func @transform_2(%arg0: i32) -> (i32, i32, i32) {
    %c0_i32 = arith.constant 0 : i32
    %c0_i32_0 = arith.constant 0 : i32
    %c0_i32_1 = arith.constant 0 : i32
    return %arg0, %c0_i32, %c0_i32_0 : i32, i32, i32
  }
}

</mosaic_0001>

<bundles_post_ra>
// kernel: tpu_custom_call.1
= control target key start
LH: loop header
LB: loop body
LE: loop exit
PB: predicated region body
PF: predicated region fallthrough
CT: control target
= control target key end

     0   :  { %7 = vsyncpa [#allocation3], 0  ;;  %s178_s0 = inlined_call_operand.hbm [shape: f32[5,16], index: 0, kind: input, shape index: {}]   ;;  %s179_s1 = inlined_call_operand.vmem [shape: s32[1,16], index: 1, kind: input, shape index: {}]   ;;  %s180_s2 = inlined_call_operand.hbm [shape: f32[1,1,1], index: 2, kind: output, shape index: {}]  }
   0x1   :  { %8 = vsyncpa [#allocation4], 0  ;;  %s149_s9 = smov [#allocation2]  }
   0x2   :  { %s15_s10 = sshll.u32 %s149_s9, 4  ;;  %s16_s10 = int_to_ptr.vmem [resolvable:$true] %s15_s10 }
   0x3   :  { %s113_s11 = scalar_lea.vmem %s16_s10, 128  ;;  %p118_p1 = scmp.lt.s32.totalorder %s16_s10, %s16_s10 }
   0x4   :  { %p114_p0 = scmp.ne.s32.totalorder %s16_s10, %s113_s11  ;;  %p119_p2 = scmp.lt.s32.totalorder %s113_s11, %s113_s11 }
   0x6   :  { %p120_p3 = por %p119_p2, %p118_p1 }
   0x8   :  { %p121_p4 = pnand %p120_p3, %p114_p0 }
   0xa   :  { %124 = shalt.err (!%p121_p4)
}
   0xb   :  { %18 = dma.hbm_to_vmem [thread:$0]  %s178_s0, 128, %s16_s10, [#allocation3]  }
   0xc   :  { %145 = dma.done.wait [#allocation3], 128  }
   0xd   :  { %146 = vsyncadd [#allocation3], 4294967168  ;;  %vm26_vm0 = vcmask 1044480   ;;  %v24_v0 = vld [vmem:[#allocation2] sm:$0x1f]  ;;  %v47_v10 = vlaneseq  ;;  %s150_s0 = smov [#allocation5]  }
   0xe   :  { %v27_v1 = vsel %vm26_vm0, %v24_v0, -inf  ;;  %v98_v12 = vld [vmem:[%s179_s1] ss:$0 sm:$0xff]  ;;  %s89_s1 = sshll.u32 %s150_s0, 4  ;;  %vm81_vm3 = vcmask 0   ;;  %s90_s1 = int_to_ptr.vmem [resolvable:$true] %s89_s1 }
   0xf   :  { %v28_v2 = vrot.slane %v27_v1, 4  ;;  %v48_v11 = vshrl.u32 %v47_v10, 7  ;;  %v76_v29 = vand.u32 127, %v47_v10  ;;  %s125_s16 = scalar_lea.vmem %s90_s1, 16  ;;  %s129_s17 = scalar_lea.vmem %s90_s1, 32 }
  0x10   :  { %p126_p5 = scmp.ne.s32.totalorder %s90_s1, %s125_s16  ;;  %p130_p6 = scmp.lt.s32.totalorder %s90_s1, %s90_s1 }
  0x11   :  { %v29_v3 = vmax.f32 %v27_v1, %v28_v2  ;;  %vm53_vm1 = vcmp.eq.s32.totalorder %v48_v11, %v98_v12  ;;  %vm77_vm2 = vcmp.lt.s32.totalorder %v76_v29, 16  ;;  %p131_p7 = scmp.lt.s32.totalorder %s129_s17, %s125_s16 }
  0x12   :  { %v54_v16 = vsel %vm53_vm1, %v24_v0, 0.0 }
  0x13   :  { %v30_v4 = vrot.slane %v29_v3, 2  ;;  %v55_v18 = vsel %vm26_vm0, %v54_v16, 0.0  ;;  %p132_p8 = por %p131_p7, %p130_p6 }
  0x14   :  { %v56_v21 = vrot.slane %v55_v18, 4 }
  0x15   :  { %v31_v5 = vmax.f32 %v29_v3, %v30_v4  ;;  %p133_p9 = pnand %p132_p8, %p126_p5 }
  0x16   :  { %v57_v24 = vadd.f32 %v56_v21, %v55_v18 }
  0x17   :  { %v32_v6 = vrot.slane %v31_v5, 1 }
  0x18   :  { %v58_v25 = vrot.slane %v57_v24, 2 }
  0x19   :  { %v33_v7 = vmax.f32 %v31_v5, %v32_v6 }
  0x1a   :  { %v59_v26 = vadd.f32 %v58_v25, %v57_v24 }
  0x1b   :  { %v34_v8 = vsub.f32 %v24_v0, %v33_v7 }
  0x1c   :  { %v60_v27 = vrot.slane %v59_v26, 1 }
  0x1d   :  { %v35_v9 = vmul.f32 1.442695, %v34_v8 }
  0x1e   :  { %v61_v31 = vadd.f32 %v60_v27, %v59_v26 }
  0x1f   :  { %101 = vpow2.f32 %v35_v9 }
  0x2c   :  { %v102_v13 = vpop.eup %101 }
  0x2d   :  { %v37_v14 = vsel %vm26_vm0, %v102_v13, 0.0 }
  0x2e   :  { %v38_v15 = vrot.slane %v37_v14, 4 }
  0x30   :  { %v39_v17 = vadd.f32 %v38_v15, %v37_v14 }
  0x32   :  { %v40_v19 = vrot.slane %v39_v17, 2 }
  0x34   :  { %v41_v20 = vadd.f32 %v40_v19, %v39_v17 }
  0x36   :  { %v42_v22 = vrot.slane %v41_v20, 1 }
  0x38   :  { %v43_v23 = vadd.f32 %v42_v22, %v41_v20 }
  0x3a   :  { %103 = vlog2.f32 %v43_v23 }
  0x47   :  { %v104_v28 = vpop.eup %103 }
  0x48   :  { %v45_v30 = vmul.f32 0.6931472, %v104_v28 }
  0x4a   :  { %v46_v32 = vadd.f32 %v45_v30, %v33_v7 }
  0x4c   :  { %v62_v33 = vsub.f32 %v46_v32, %v61_v31 }
  0x4e   :  { %v78_v34 = vsel %vm77_vm2, %v62_v33, 0.0 }
  0x4f   :  { %79 = vadd.xlane.f32.xlu0 %v78_v34 }
  0xd8   :  { %v80_v35 = vpop.xlane.xlu0 %79 }
  0xd9   :  { %82 = vst.msk [vmem:[#allocation5] sm:$0x1] %vm81_vm3, %v80_v35 }
  0xda   :  { %136 = shalt.err (!%p133_p9)
}
  0xdb   :  { %92 = dma.vmem_to_hbm [thread:$0]  %s90_s1, 16, %s180_s2, [#allocation4]  }
  0xdc   :  { %147 = dma.done.wait [#allocation4], 16  }
  0xdd   :  { %148 = vsyncadd [#allocation4], 4294967280 }
  0xde   :  { %96 = vsyncpa [#allocation3], 1 }
  0xdf   :  { %97 = vsyncpa [#allocation4], 1 }

</bundles_post_ra>
